<compile_context>
chip_gen: v7x
topology: tpu7x:2x2x1
jax: 0.10.0
libtpu: 0.0.40
codegen_flags: <defaults>
</compile_context>

<pallas_src>
import functools
import math

import jax
import jax.numpy as jnp
from jax.experimental import pallas as pl
from jax.experimental.pallas import tpu as pltpu

_MIB = 1024 * 1024


# -----------------------------------------------------------------------------
# Small helpers
# -----------------------------------------------------------------------------
def _cdiv(a, b):
    return -(-a // b)


def _round_up(a, b):
    return _cdiv(a, b) * b


def _sublane_pack(itemsize):
    # Sublane packing of the second-to-last dim: 8 rows/vreg for 32-bit,
    # 16 for 16-bit, 32 for 8-bit types.
    return max(8, 32 // max(1, int(itemsize)))


def _padded_tile_bytes(rows, cols, itemsize):
    sub = _sublane_pack(itemsize)
    return _round_up(rows, sub) * _round_up(cols, 128) * itemsize


def _vmem_capacity_bytes():
    try:
        return int(pltpu.get_tpu_info().vmem_capacity_bytes)
    except Exception:
        return 64 * _MIB  # conservative fallback (v7x per-TensorCore physical VMEM)


# -----------------------------------------------------------------------------
# Kernels
# -----------------------------------------------------------------------------
def _reduce_step_kernel(x_ref, o_ref, acc_ref, *, aggregation, inv_m):
    """One person-step of the grid reduction over a dense (TILE_N, TILE_D) tile."""
    m = pl.program_id(2)
    x = x_ref[...].astype(jnp.float32)

    @pl.when(m == 0)
    def _init():
        acc_ref[...] = x

    @pl.when(m > 0)
    def _accum():
        if aggregation == "mean":
            acc_ref[...] = acc_ref[...] + x
        else:
            acc_ref[...] = jnp.maximum(acc_ref[...], x)

    @pl.when(m == pl.num_programs(2) - 1)
    def _finalize():
        r = acc_ref[...]
        if aggregation == "mean":
            r = r * inv_m
        o_ref[...] = r.astype(o_ref.dtype)          # single lane-dense store per tile


def _blockwise_mean_kernel(x_ref, o_ref, *, inv_m):
    # Fallback: person axis inside the block (sublane-padded), reduce over axis 1.
    x = x_ref[...].astype(jnp.float32)              # (TILE_N, M, D)
    o_ref[...] = (jnp.sum(x, axis=1) * inv_m).astype(o_ref.dtype)


def _blockwise_max_kernel(x_ref, o_ref):
    o_ref[...] = jnp.max(x_ref[...], axis=1)


# -----------------------------------------------------------------------------
# Main path: d % 128 == 0  ->  person axis on the grid, dense 2-D tiles
# -----------------------------------------------------------------------------
def _extract_persons_dense(x3, n, num_persons, d, aggregation, target_bytes, capacity):
    itemsize = jnp.dtype(x3.dtype).itemsize
    sub = _sublane_pack(itemsize)
    q = d // 128

    # --- choose (tile_n, tile_d): ~target_bytes of useful input per grid step.
    if _padded_tile_bytes(min(n, sub), d, itemsize) > target_bytes:
        # Even one sublane-group of rows at full d is over budget: tile along d.
        tile_n = min(n, sub)
        kmax = max(1, int(target_bytes // (sub * 128 * itemsize)))
        tile_k = 1
        for cand in range(min(q, kmax), 0, -1):      # largest divisor of q <= kmax
            if q % cand == 0:
                tile_k = cand
                break
        tile_d = 128 * tile_k
    else:
        rows = (int(target_bytes // (d * itemsize)) // sub) * sub
        tile_n = min(n, max(sub, rows))
        tile_d = d

    # --- v7x insurance: keep >= 2 parallel blocks so both TensorCores get work.
    if _cdiv(n, tile_n) * (d // tile_d) == 1:
        split = next((f for f in range(2, q + 1) if q % f == 0), None)
        if split is not None:
            tile_d = d // split
        else:
            half = _round_up(_cdiv(n, 2), sub)
            if half < n:
                tile_n = half

    dblk = d // tile_d
    grid = (_cdiv(n, tile_n), dblk, num_persons)

    # --- explicit VMEM budget: 2x input + 2x output (double buffering) + f32 scratch.
    io_bytes = _padded_tile_bytes(tile_n, tile_d, itemsize)
    scratch_bytes = _padded_tile_bytes(tile_n, tile_d, 4)
    need = 4 * io_bytes + scratch_bytes + 2 * _MIB
    vmem_limit = int(min(0.85 * capacity, max(need, 32 * _MIB)))

    x2 = x3.reshape(n, num_persons * d)              # free, metadata-only

    inv_m = float(1.0 / num_persons)
    kernel = functools.partial(_reduce_step_kernel, aggregation=aggregation, inv_m=inv_m)

    def in_index(i, j, m):
        return (i, m * dblk + j)                     # person m, d-tile j of (n, M*d)

    def out_index(i, j, m):
        return (i, j)                                # same block across m -> accumulator

    # TODO(synk): if xprof shows exposed DMA between person steps, add
    # pipeline_mode=pl.Buffered(3) on the input BlockSpec.
    return pl.pallas_call(
        kernel,
        out_shape=jax.ShapeDtypeStruct((n, d), x3.dtype),
        grid=grid,
        in_specs=[pl.BlockSpec((tile_n, tile_d), in_index)],
        out_specs=pl.BlockSpec((tile_n, tile_d), out_index),
        scratch_shapes=[pltpu.VMEM((tile_n, tile_d), jnp.float32)],
        compiler_params=pltpu.CompilerParams(
            dimension_semantics=("parallel", "parallel", "arbitrary"),
            vmem_limit_bytes=vmem_limit),
    )(x2)


# -----------------------------------------------------------------------------
# Fallback path: d not a multiple of 128  ->  person axis inside the block
# -----------------------------------------------------------------------------
def _extract_persons_ragged(x3, n, num_persons, d, aggregation, target_bytes, capacity):
    # Block dims must be full extents when not (8,128)-aligned, so the person axis
    # lands on (padded) sublanes here.  Only hit for lane-ragged trailing dims.
    itemsize = jnp.dtype(x3.dtype).itemsize
    sub = _sublane_pack(itemsize)
    m_pad = _round_up(num_persons, sub)
    d_pad = _round_up(d, 128)
    row_bytes = m_pad * d_pad * itemsize
    tile_n = min(n, max(1, int(target_bytes // row_bytes)))
    grid = (_cdiv(n, tile_n),)

    in_bytes = tile_n * row_bytes
    out_bytes = _padded_tile_bytes(tile_n, d, itemsize)
    f32_tmp = tile_n * m_pad * d_pad * 4
    need = 2 * in_bytes + 2 * out_bytes + f32_tmp + 2 * _MIB
    vmem_limit = int(min(0.9 * capacity, max(need, 32 * _MIB)))

    if aggregation == "mean":
        kernel = functools.partial(_blockwise_mean_kernel, inv_m=float(1.0 / num_persons))
    else:
        kernel = _blockwise_max_kernel

    return pl.pallas_call(
        kernel,
        out_shape=jax.ShapeDtypeStruct((n, d), x3.dtype),
        grid=grid,
        in_specs=[pl.BlockSpec((tile_n, num_persons, d), lambda i: (i, 0, 0))],
        out_specs=pl.BlockSpec((tile_n, d), lambda i: (i, 0)),
        compiler_params=pltpu.CompilerParams(
            dimension_semantics=("parallel",),
            vmem_limit_bytes=vmem_limit),
    )(x3)


# -----------------------------------------------------------------------------
# Pallas wrapper: (N*M, ...) -> (N, ...) with mean/max over the person axis
# -----------------------------------------------------------------------------
def extract_persons_pallas(x, num_persons, aggregation):
    if aggregation not in ("mean", "max"):
        raise ValueError("Invalid aggregation method.")
    nm = x.shape[0]
    assert nm % num_persons == 0, "leading dim must be batch * num_persons"
    n = nm // num_persons
    rest = tuple(x.shape[1:])
    d = math.prod(rest) if rest else 1

    if num_persons == 1:
        return x.reshape((n,) + rest)                # mean/max over one person = identity

    x3 = x.reshape(n, num_persons, d)                # free, metadata-only

    capacity = _vmem_capacity_bytes()
    # ~2-8 MiB of useful input per grid step, derived per generation from VMEM size.
    target_bytes = int(max(2 * _MIB, min(8 * _MIB, capacity // 16)))

    if d % 128 == 0:
        out = _extract_persons_dense(x3, n, num_persons, d, aggregation,
                                     target_bytes, capacity)
    else:
        out = _extract_persons_ragged(x3, n, num_persons, d, aggregation,
                                      target_bytes, capacity)
    return out.reshape((n,) + rest)


# -----------------------------------------------------------------------------
# Module-equivalent wrapper
# -----------------------------------------------------------------------------
class Person2Batch:
    def __init__(self, person_dimension: int, num_persons: int,
                 aggregation: str = "mean") -> None:
        self.person_dimension = person_dimension
        # Kept only for API parity with the reference (rank-5 assumption);
        # forward() derives the real permutation from x.ndim (identical for 5-D).
        if person_dimension == 1:
            self.permutation = None
        else:
            self.permutation = [0, person_dimension] + [
                i for i in range(1, 5) if i != person_dimension]
        self.num_persons = num_persons
        if aggregation not in ("mean", "max"):
            raise ValueError("Invalid aggregation method.")
        self._aggregation = aggregation

    def forward(self, x: jax.Array) -> jax.Array:
        # Intentionally NOT a Pallas kernel: merging the person dim into batch is
        # metadata-only when it is already adjacent to batch (pure reshape), and
        # otherwise a single XLA transpose (one HBM read + one write) over merged,
        # lane-dense dimension groups — a Pallas copy on top would double traffic.
        s = tuple(x.shape)
        p = self.person_dimension
        if p != 1:
            pre = math.prod(s[1:p]) if p > 1 else 1
            post = math.prod(s[p + 1:]) if p + 1 < len(s) else 1
            x = x.reshape(s[0], pre, s[p], post)
            x = jnp.transpose(x, (0, 2, 1, 3))
            return x.reshape((s[0] * s[p],) + s[1:p] + s[p + 1:])
        return x.reshape((s[0] * s[1],) + s[2:])

    def extract_persons(self, x: jax.Array) -> jax.Array:
        # Assumes the leading axis is batch-major / person-minor, as produced by
        # forward() (same assumption as the PyTorch reference .view()).
        return extract_persons_pallas(x, self.num_persons, self._aggregation)


# -----------------------------------------------------------------------------
# Demo / self-check
# -----------------------------------------------------------------------------
if __name__ == "__main__":
    key = jax.random.PRNGKey(0)
    # (batch, C, T, V, person) with person_dimension=4 (NCTVM skeleton layout)
    N, C, T, V, M = 2, 4, 8, 16, 2
    x = jax.random.normal(key, (N, C, T, V, M), dtype=jnp.float32)

    ok = True
    for agg in ("mean", "max"):
        mod = Person2Batch(person_dimension=4, num_persons=M, aggregation=agg)

        # forward: move person into batch (metadata / single transpose, no kernel)
        y = jax.block_until_ready(mod.forward(x))
        y_ref = jnp.transpose(x, (0, 4, 1, 2, 3)).reshape(N * M, C, T, V)
        ok &= y.shape == (N * M, C, T, V)
        ok &= bool(jnp.allclose(y, y_ref))

        # extract_persons: aggregate persons back out of the batch dim (Pallas,
        # dense grid-reduction path since C*T*V = 512 is a multiple of 128)
        z = jax.block_until_ready(mod.extract_persons(y))
        y5 = y_ref.reshape(N, M, C, T, V)
        z_ref = jnp.mean(y5, axis=1) if agg == "mean" else jnp.max(y5, axis=1)
        ok &= z.shape == (N, C, T, V)
        ok &= bool(jnp.allclose(z, z_ref, atol=1e-6, rtol=1e-6))

    # person_dimension == 1: forward is a pure reshape
    mod1 = Person2Batch(person_dimension=1, num_persons=M, aggregation="mean")
    x1 = jnp.transpose(x, (0, 4, 1, 2, 3))            # (N, M, C, T, V)
    y1 = jax.block_until_ready(mod1.forward(x1))
    ok &= bool(jnp.allclose(y1, x1.reshape(N * M, C, T, V)))

    # ragged trailing dims (prod = 105, not a multiple of 128): fallback path
    w = jax.random.normal(jax.random.PRNGKey(1), (N * M, 3, 7, 5), dtype=jnp.float32)
    zz = jax.block_until_ready(mod1.extract_persons(w))
    zz_ref = jnp.mean(w.reshape(N, M, 3, 7, 5), axis=1)
    ok &= bool(jnp.allclose(zz, zz_ref, atol=1e-6, rtol=1e-6))

    if ok:
        print("KERNEL_OK")
    else:
        raise SystemExit("mismatch vs reference")
</pallas_src>

<mosaic_0001>
module attributes {stable_mosaic.version = 11 : i64} {
  func.func @_reduce_step_kernel(%arg0: i32, %arg1: i32, %arg2: i32, %arg3: memref<2x256xf32, #tpu.memory_space<vmem>>, %arg4: memref<2x256xf32, #tpu.memory_space<vmem>>, %arg5: memref<2x256xf32, #tpu.memory_space<vmem>>) attributes {dimension_semantics = [#tpu.dimension_semantics<parallel>, #tpu.dimension_semantics<parallel>, #tpu.dimension_semantics<arbitrary>], iteration_bounds = array<i64: 1, 2, 2>, scalar_prefetch = 0 : i64, scratch_operands = 1 : i64, tpu.core_type = #tpu.core_type<tc>, window_params = [{transform_indices = @transform_0, window_bounds = array<i64: 2, 256>}, {transform_indices = @transform_1, window_bounds = array<i64: 2, 256>}]} {
    %c0 = arith.constant 0 : index
    %c0_0 = arith.constant 0 : index
    %0 = vector.load %arg3[%c0, %c0_0] : memref<2x256xf32, #tpu.memory_space<vmem>>, vector<2x256xf32>
    %c0_i32 = arith.constant 0 : i32
    %1 = arith.cmpi eq, %arg2, %c0_i32 : i32
    %2 = arith.extui %1 : i1 to i32
    %c0_i32_1 = arith.constant 0 : i32
    %3 = arith.cmpi ne, %2, %c0_i32_1 : i32
    scf.if %3 {
      %c0_5 = arith.constant 0 : index
      %c0_6 = arith.constant 0 : index
      %10 = vector.load %arg5[%c0_5, %c0_6] : memref<2x256xf32, #tpu.memory_space<vmem>>, vector<2x256xf32>
      tpu.vector_store %arg5[%c0_5, %c0_6], %0 {strides = array<i32>} : memref<2x256xf32, #tpu.memory_space<vmem>>, vector<2x256xf32>,
    } else {
    }
    %c0_i32_2 = arith.constant 0 : i32
    %4 = arith.cmpi sgt, %arg2, %c0_i32_2 : i32
    %5 = arith.extui %4 : i1 to i32
    %c0_i32_3 = arith.constant 0 : i32
    %6 = arith.cmpi ne, %5, %c0_i32_3 : i32
    scf.if %6 {
      %c0_5 = arith.constant 0 : index
      %c0_6 = arith.constant 0 : index
      %10 = vector.load %arg5[%c0_5, %c0_6] : memref<2x256xf32, #tpu.memory_space<vmem>>, vector<2x256xf32>
      %11 = arith.addf %10, %0 : vector<2x256xf32>
      %c0_7 = arith.constant 0 : index
      %c0_8 = arith.constant 0 : index
      %12 = vector.load %arg5[%c0_7, %c0_8] : memref<2x256xf32, #tpu.memory_space<vmem>>, vector<2x256xf32>
      tpu.vector_store %arg5[%c0_7, %c0_8], %11 {strides = array<i32>} : memref<2x256xf32, #tpu.memory_space<vmem>>, vector<2x256xf32>,
    } else {
    }
    %c1_i32 = arith.constant 1 : i32
    %7 = arith.cmpi eq, %arg2, %c1_i32 : i32
    %8 = arith.extui %7 : i1 to i32
    %c0_i32_4 = arith.constant 0 : i32
    %9 = arith.cmpi ne, %8, %c0_i32_4 : i32
    scf.if %9 {
      %c0_5 = arith.constant 0 : index
      %c0_6 = arith.constant 0 : index
      %10 = vector.load %arg5[%c0_5, %c0_6] : memref<2x256xf32, #tpu.memory_space<vmem>>, vector<2x256xf32>
      %cst = arith.constant 5.000000e-01 : f32
      %11 = vector.broadcast %cst : f32 to vector<2x256xf32>
      %12 = arith.mulf %10, %11 : vector<2x256xf32>
      %c0_7 = arith.constant 0 : index
      %c0_8 = arith.constant 0 : index
      %13 = vector.load %arg4[%c0_7, %c0_8] : memref<2x256xf32, #tpu.memory_space<vmem>>, vector<2x256xf32>
      tpu.vector_store %arg4[%c0_7, %c0_8], %12 {strides = array<i32>} : memref<2x256xf32, #tpu.memory_space<vmem>>, vector<2x256xf32>,
    } else {
    }
    return
  }
  func.func @transform_0(%arg0: i32, %arg1: i32, %arg2: i32) -> (i32, i32) {
    %c2_i32 = arith.constant 2 : i32
    %0 = arith.muli %arg2, %c2_i32 : i32
    %1 = arith.addi %0, %arg1 : i32
    %c0_i32 = arith.constant 0 : i32
    return %arg0, %1 : i32, i32
  }
  func.func @transform_1(%arg0: i32, %arg1: i32, %arg2: i32) -> (i32, i32) {
    %c0_i32 = arith.constant 0 : i32
    return %arg0, %arg1 : i32, i32
  }
}

</mosaic_0001>

<bundles_post_ra>
// kernel: tpu_custom_call.1
= control target key start
LH: loop header
LB: loop body
LE: loop exit
PB: predicated region body
PF: predicated region fallthrough
CT: control target
= control target key end

     0   :  { %6 = vsyncpa [#allocation4], 0  ;;  %s809_s0 = inlined_call_operand.hbm [shape: f32[2,1024], index: 0, kind: input, shape index: {}]   ;;  %s810_s1 = inlined_call_operand.hbm [shape: f32[2,512], index: 1, kind: output, shape index: {}]  }
   0x1   :  { %8 = vsyncpa [#allocation4 + $0x1], 0 }
   0x2   :  { %9 = vsyncpa [#allocation5], 0 }
   0x3   :  { %11 = vsyncpa [#allocation5 + $0x1], 0  ;;  %s588_s6 = smov 0   ;;  %s590_s7 = smov 0  }
   0x4   :  { %s592_s8 = smov 0   ;;  %s594_s9 = smov 0  }
   0x5   :  { %s596_s10 = smov 0   ;;  %s598_s11 = smov 0  }
   0x6   :  { %s600_s12 = smov 0   ;;  %s602_s13 = smov 0  }
   0x7   :  { %s604_s14 = smov 0   ;;  %s606_s15 = smov 0  }
   0x8   :  { %s608_s16 = smov 0  }
   0x9 LB: > { %s297_s17 = sadd.s32 4294967295, %s574_s16   ;;  %s298_s18 = sadd.s32 4294967294, %s574_s16   ;;  %s574_s16 = sphi %s608_s16, %s17_s16   ;;  %s570_s15 = sphi %s606_s15, %s830_s15   ;;  %s566_s14 = sphi %s604_s14, %s829_s14   ;;  %s562_s13 = sphi %s602_s13, %s828_s13   ;;  %s558_s12 = sphi %s600_s12, %s827_s12   ;;  %s554_s11 = sphi %s598_s11, %s826_s11   ;;  %s550_s10 = sphi %s596_s10, %s825_s10   ;;  %s546_s9 = sphi %s594_s9, %s824_s9   ;;  %s542_s8 = sphi %s592_s8, %s823_s8   ;;  %s538_s7 = sphi %s590_s7, %s822_s7   ;;  %s534_s6 = sphi %s588_s6, %s821_s6  }
   0xa   : > { %s29_s19 = sadd.s32 1, %s566_s14  ;;  %s32_s20 = sadd.s32 1, %s570_s15 }
   0xb   : > { %p30_p0 = scmp.ge.s32.totalorder %s29_s19, 2  ;;  %s299_s21 = sshll.u32 %s566_s14, 1 }
   0xc   : > { %s647_s22 = sadd.s32 %s570_s15, %s299_s21  ;;  %s49_s23 = sadd.s32 1, %s554_s11 }
   0xd   : > { %s832_s19 = smov (%p30_p0, %s29_s19), 0  ;;  %s834_s20 = smov (!%p30_p0, %s32_s20), %s570_s15 }
   0xe   : > { %s300_s24 = sshll.u32 %s832_s19, 1  ;;  %p56_p1 = scmp.ne.s32.totalorder %s554_s11, %s550_s10 }
   0xf   : > { %p34_p2 = scmp.ge.s32.totalorder %s834_s20, 2  ;;  %p57_p3 = scmp.eq.s32.totalorder %s574_s16, 0 }
  0x10   : > { %p62_p4 = scmp.ne.s32.totalorder %s550_s10, %s546_s9  ;;  %p63_p5 = scmp.eq.s32.totalorder %s297_s17, 0 }
  0x11   : > { %s836_s20 = smov (%p34_p2, %s834_s20), 0  ;;  %p660_p6 = por %p57_p3, %p56_p1 }
  0x12   : > { %p664_p7 = por %p63_p5, %p62_p4  ;;  %s43_s27 = sadd.s32 %s300_s24, %s836_s20 }
  0x13   : > { %s73_s28 = ssub.s32 %s570_s15, %s836_s20  ;;  %s45_s29 = ssub.s32 %s647_s22, %s43_s27 }
  0x14   : > { %p75_p8 = scmp.eq.s32.totalorder %s73_s28, 0  ;;  %p47_p9 = scmp.eq.s32.totalorder %s45_s29, 0 }
  0x15   : > { %s77_s30 = sadd.s32 1, %s542_s8  ;;  %p87_p10 = scmp.ne.s32.totalorder %s542_s8, %s538_s7 }
  0x16   : > { %s674_s2 = scalar_select %p75_p8, %s542_s8, %s77_s30  }
  0x17   : > { %s677_s3 = scalar_select %p47_p9, %s554_s11, %s49_s23  }
  0x18   : > { %p88_p11 = scmp.eq.s32.totalorder %s297_s17, 3  ;;  %p93_p12 = scmp.ne.s32.totalorder %s538_s7, %s534_s6 }
  0x19   : > { %p94_p13 = scmp.eq.s32.totalorder %s298_s18, 3  ;;  %p332_p2 = scmp.lt.s32.totalorder %s574_s16, 4 }
  0x1a   : > { %p685_p0 = por %p88_p11, %p87_p10  ;;  %s114_s9 = sand.u32 1, %s554_s11  }
  0x1b   : > { %p689_p1 = por %p94_p13, %p93_p12  ;;  %s318_s21 = sshll.u32 %s647_s22, 6 }
  0x1c   : > { %s814_s4 = scalar_select %p685_p0, 1, 0 }
  0x1d   : > { %s815_s5 = scalar_select %p689_p1, 1, 0 }
  0x1e   : > { %s303_s23 = sshll.u32 %s114_s9, 2  ;;  %s699_s28 = scalar_lea.hbm %s809_s0, %s318_s21 }
  0x1f   : > { %s118_s17 = scalar_lea.vmem [#allocation3], %s303_s23  ;;  %p703_p3 = pnand %p332_p2, %p660_p6 }
  0x20   : > { %s130_s18 = sshll.u32 %s118_s17, 4  ;;  %s115_s22 = scalar_lea.sflag [#allocation4], %s114_s9  ;;  %s707_s18 = int_to_ptr.vmem [resolvable:$true] %s130_s18 }
  0x21   : > { %s422_s30 = scalar_lea.hbm %s699_s28, 64  ;;  %p424_p9 = pneg %p703_p3 }
  0x22   : > { %p423_p8 = scmp.ne.s32.totalorder %s699_s28, %s422_s30  ;;  %s427_s23 = scalar_lea.hbm %s809_s0, 256 }
  0x23   : > { %p428_p6 = scmp.lt.u32.totalorder %s699_s28, %s809_s0  ;;  %p429_p12 = scmp.lt.u32.totalorder %s427_s23, %s422_s30 }
  0x24   : > { %p425_p10 = pnand %p424_p9, %p423_p8  ;;  %p431_p2 = scmp.lt.u32.totalorder %s422_s30, %s699_s28 }
  0x25   : > { %p430_p13 = por %p429_p12, %p428_p6 }
  0x26   : > { %p426_p11 = pneg %p425_p10 }
  0x27   : > { %p432_p4 = por %p431_p2, %p430_p13 }
  0x29   : > { %p433_p5 = pnand %p432_p4, %p426_p11 }
  0x2b   : > { %436 = shalt.err (!%p433_p5)
}
  0x2c   : > { %s437_s9 = scalar_lea.vmem %s707_s18, 64  ;;  %s576_s17 = smov [#allocation3]  }
  0x2d   : > { %p438_p8 = scmp.ne.s32.totalorder %s707_s18, %s437_s9  ;;  %s442_s25 = sshll.u32 %s576_s17, 4  ;;  %s443_s25 = int_to_ptr.vmem [resolvable:$false] %s442_s25 }
  0x2e   : > { %s444_s21 = scalar_lea.vmem %s443_s25, 128  ;;  %p445_p0 = scmp.lt.s32.totalorder %s707_s18, %s443_s25 }
  0x2f   : > { %p440_p10 = pnand %p438_p8, %p424_p9  ;;  %p446_p6 = scmp.lt.s32.totalorder %s444_s21, %s437_s9 }
  0x31   : > { %p441_p1 = pneg %p440_p10  ;;  %p447_p12 = por %p446_p6, %p445_p0 }
  0x33   : > { %p448_p13 = pnand %p447_p12, %p441_p1 }
  0x35   : > { %451 = shalt.err (!%p448_p13)
}
  0x36   : > { %327 = dma.hbm_to_vmem [thread:$0]  (!%p703_p3), %s699_s28, 64, %s707_s18, %s115_s22  }
  0x37   : > { %p817_p4 = scmp.lt.s32.totalorder %s574_s16, 5  ;;  %p818_p5 = scmp.ge.s32.totalorder %s574_s16, 1 }
  0x39   : > { %p136_p9 = pnand %p818_p5, %p817_p4 }
  0x3a   : > { %s141_s30 = sand.u32 (!%p136_p9), 1, %s550_s10  }
  0x3b   : > { %139 = sbr.rel (%p136_p9) target bundleno = 119 (0x77), region = 24  ;;  %s308_s23 = sshll.u32 (!%p136_p9), %s141_s30, 2 }
  0x3c   : > { %s142_s24 = scalar_lea.sflag (!%p136_p9), [#allocation4], %s141_s30  ;;  %s145_s27 = scalar_lea.vmem (!%p136_p9), [#allocation3], %s308_s23 }
  0x42   : > { %525 = dma.done.wait (%p664_p7), %s142_s24, 64  }
  0x43   : > { %527 = vsyncadd (%p664_p7), %s142_s24, 4294967232  ;;  %s161_s29 = sand.u32 1, %s538_s7   ;;  %v168_v0 = vld [vmem:[%s145_s27] sm:$0xf]  ;;  %p310_p0 = scmp.ne.s32.totalorder %s558_s12, 0 }
  0x44   : > { %s309_s9 = sshll.u32 %s161_s29, 2  ;;  %173 = vst [vmem:[#allocation2] sm:$0xf] (!%p310_p0), %v168_v0 }
  0x45   : > { %s163_s28 = scalar_lea.vmem [#allocation6], %s309_s9  ;;  %172 = sbr.rel (%p310_p0) target bundleno = 76 (0x4c), region = 32 }
  0x4c PF: > { %p311_p1 = scmp.le.s32.totalorder %s558_s12, 0 }
  0x4d   : > { %v178_v1 = vld [vmem:[#allocation2] sm:$0xf] (!%p311_p1) }
  0x4e   : > { %177 = sbr.rel (%p311_p1) target bundleno = 85 (0x55), region = 36  ;;  %v179_v2 = vadd.f32 (!%p311_p1), %v178_v1, %v168_v0 }
  0x50   : > { %180 = vst [vmem:[#allocation2] sm:$0xf] (!%p311_p1), %v179_v2 }
  0x55 PF: > { %p312_p3 = scmp.ne.s32.totalorder %s558_s12, 1 }
  0x57   : > { %184 = sbr.rel (%p312_p3) target bundleno = 94 (0x5e), region = 40  ;;  %v185_v3 = vld [vmem:[#allocation2] sm:$0xf] (!%p312_p3) }
  0x58   : > { %v186_v4 = vmul.f32 (!%p312_p3), 0.5, %v185_v3 }
  0x5a   : > { %187 = vst [vmem:[%s163_s28] sm:$0xf] (!%p312_p3), %v186_v4 }
  0x5e PF: > { %s319_s26 = sshll.u32 %s562_s13, 6  ;;  %s205_s25 = sshll.u32 %s163_s28, 4  ;;  %s206_s25 = int_to_ptr.vmem [resolvable:$true] %s205_s25 }
  0x5f   : > { %s753_s17 = scalar_lea.hbm %s810_s1, %s319_s26  ;;  %s189_s21 = scalar_lea.sflag [#allocation5], %s161_s29 }
  0x60   : > { %s452_s30 = scalar_lea.vmem %s206_s25, 64  ;;  %p819_p11 = scmp.ne.s32.totalorder %s814_s4, 0 }
  0x61   : > { %p453_p7 = scmp.ne.s32.totalorder %s206_s25, %s452_s30  ;;  %s577_s12 = smov [#allocation6]  }
  0x62   : > { %s456_s23 = sshll.u32 %s577_s12, 4  ;;  %s457_s23 = int_to_ptr.vmem [resolvable:$false] %s456_s23 }
  0x63   : > { %p454_p2 = pnand %p453_p7, %p819_p11  ;;  %s458_s24 = scalar_lea.vmem %s457_s23, 128 }
  0x64   : > { %p459_p10 = scmp.lt.s32.totalorder %s206_s25, %s457_s23  ;;  %p460_p6 = scmp.lt.s32.totalorder %s458_s24, %s452_s30 }
  0x65   : > { %p455_p8 = pneg %p454_p2 }
  0x66   : > { %p461_p12 = por %p460_p6, %p459_p10 }
  0x68   : > { %p462_p13 = pnand %p461_p12, %p455_p8 }
  0x6a   : > { %465 = shalt.err (!%p462_p13)
}
  0x6b   : > { %s466_s13 = scalar_lea.hbm %s753_s17, 64  ;;  %s470_s9 = scalar_lea.hbm %s810_s1, 128 }
  0x6c   : > { %p467_p4 = scmp.ne.s32.totalorder %s753_s17, %s466_s13  ;;  %p471_p0 = scmp.lt.u32.totalorder %s753_s17, %s810_s1 }
  0x6d   : > { %p472_p1 = scmp.lt.u32.totalorder %s470_s9, %s466_s13  ;;  %p474_p7 = scmp.lt.u32.totalorder %s466_s13, %s753_s17 }
  0x6e   : > { %p468_p5 = pnand %p467_p4, %p819_p11 }
  0x6f   : > { %p473_p3 = por %p472_p1, %p471_p0 }
  0x70   : > { %p469_p9 = pneg %p468_p5 }
  0x71   : > { %p475_p2 = por %p474_p7, %p473_p3 }
  0x73   : > { %p476_p8 = pnand %p475_p2, %p469_p9 }
  0x75   : > { %479 = shalt.err (!%p476_p8)
}
  0x76   : > { %322 = dma.vmem_to_hbm [thread:$0]  (%p819_p11), %s206_s25, 64, %s753_s17, %s189_s21  }
  0x77 PF: > { %p333_p10 = scmp.ge.s32.totalorder %s574_s16, 2  ;;  %s217_s18 = sand.u32 1, %s534_s6  }
  0x78   : > { %p820_p6 = scmp.ne.s32.totalorder %s815_s5, 0  ;;  %s218_s22 = scalar_lea.sflag [#allocation5], %s217_s18 }
  0x7a   : > { %p329_p12 = pnand %p333_p10, %p820_p6 }
  0x7c   : > { %529 = dma.done.wait (!%p329_p12), %s218_s22, 64  }
  0x7d   : > { %531 = vsyncadd (!%p329_p12), %s218_s22, 4294967232  ;;  %s17_s16 = sadd.s32 1, %s574_s16   ;;  %s821_s6 = smov %s538_s7 }
  0x7e   : > { %p14_p13 = scmp.ge.s32.totalorder %s17_s16, 6   ;;  %s822_s7 = smov %s542_s8 }
  0x7f   : > { %s823_s8 = smov %s674_s2  ;;  %s824_s9 = smov %s550_s10 }
  0x80   : > { %s825_s10 = smov %s554_s11  ;;  %s826_s11 = smov %s677_s3 }
  0x81   : > { %s827_s12 = smov %s566_s14  ;;  %s828_s13 = smov %s570_s15 }
  0x82   : > { %s829_s14 = smov %s832_s19  ;;  %s830_s15 = smov %s836_s20 }
  0x83   :  { %16 = sbr.rel (!%p14_p13) target bundleno = 9 (0x9), region = 81 }
  0x8a   :  { %223 = vsyncpa [#allocation4], 1 }
  0x8b   :  { %225 = vsyncpa [#allocation4 + $0x1], 1 }
  0x8c   :  { %226 = vsyncpa [#allocation5], 1 }
  0x8d   :  { %228 = vsyncpa [#allocation5 + $0x1], 1 }

</bundles_post_ra>
